<compile_context>
chip_gen: v5e
topology: v5e:2x2
jax: 0.10.0
libtpu: 0.0.40
codegen_flags: <defaults>
</compile_context>

<pallas_src>
import functools

import jax
import jax.numpy as jnp
from jax.experimental import pallas as pl
from jax.experimental.pallas import tpu as pltpu

PACK = 4  # rows of E packed into one 128-wide lane row (4 * 32 = 128)


def highway_kernel(x_ref, w_ref, b_ref, o_ref):
    x = x_ref[...]                                   # (tm, P), P = PACK*E = 128
    p = x.shape[-1]
    # Fused matmul: (tm, P) @ (P, 2P) -> [proj half | gate half], f32 on MXU.
    y = jnp.dot(x, w_ref[...], preferred_element_type=jnp.float32) + b_ref[...]
    proj = jnp.maximum(y[:, :p], 0.0)                # relu branch
    gate = jax.nn.sigmoid(y[:, p:])                  # gate branch (EUP)
    xf = x.astype(jnp.float32)
    # gate*proj + (1-gate)*x  ==  x + gate*(proj - x)
    o_ref[...] = (xf + gate * (proj - xf)).astype(o_ref.dtype)


def make_highway_params(w_proj, b_proj, w_gate, b_gate, pack=PACK):
    """Precompute (once, outside the hot path) the fused lane-packed params.

    w_*: (E, E) in PyTorch (out, in) layout.  b_*: (E,).
    Returns:
      w_cat: (pack*E, 2*pack*E) = [block_diag_pack(Wp^T) | block_diag_pack(Wg^T)]
      b_cat: (1, 2*pack*E)      = [tile(bp, pack) | tile(bg, pack)]
    """
    eye = jnp.eye(pack, dtype=w_proj.dtype)
    wp_blk = jnp.kron(eye, w_proj.T)                 # (pack*E, pack*E) block-diag
    wg_blk = jnp.kron(eye, w_gate.T)
    w_cat = jnp.concatenate([wp_blk, wg_blk], axis=1)
    b_cat = jnp.concatenate(
        [jnp.tile(b_proj, pack), jnp.tile(b_gate, pack)]).reshape(1, -1)
    return w_cat, b_cat


@functools.partial(jax.jit, static_argnames=("tm_max",))
def highway(x, w_cat, b_cat, *, tm_max=4096):
    """x: (N, E) float32.  w_cat/b_cat: from make_highway_params."""
    N, E = x.shape
    P = PACK * E

    # Lane packing: (N, E) -> (N/PACK, PACK*E).  Contiguous row-major, so this
    # is a free relayout.  Only pad (<= PACK-1 rows) if N % PACK != 0.
    rem = (-N) % PACK
    if rem:
        x = jnp.concatenate([x, jnp.zeros((rem, E), x.dtype)], axis=0)
    n_rows = (N + rem) // PACK
    xp = x.reshape(n_rows, P)

    # Row tile: multiple of 8 sublanes, capped by tm_max, and capped so the
    # grid has >= 2 steps (feeds both TensorCores on v7x).
    half = -(-n_rows // 2)                           # cdiv(n_rows, 2)
    tm = min(tm_max, max(8, ((half + 7) // 8) * 8))
    grid = (pl.cdiv(n_rows, tm),)

    itemsize = x.dtype.itemsize
    cost = pl.CostEstimate(
        flops=2 * n_rows * P * (2 * P) + 5 * n_rows * P,
        transcendentals=n_rows * P,                  # sigmoid
        bytes_accessed=2 * n_rows * P * itemsize + (w_cat.size + b_cat.size) * 4,
    )

    out = pl.pallas_call(
        highway_kernel,
        out_shape=jax.ShapeDtypeStruct((n_rows, P), x.dtype),
        grid=grid,
        in_specs=[
            pl.BlockSpec((tm, P), lambda i: (i, 0)),          # x tiles (pipelined)
            pl.BlockSpec((P, 2 * P), lambda i: (0, 0)),       # fused weights (resident)
            pl.BlockSpec((1, 2 * P), lambda i: (0, 0)),       # fused biases (resident)
        ],
        out_specs=pl.BlockSpec((tm, P), lambda i: (i, 0)),
        compiler_params=pltpu.CompilerParams(
            dimension_semantics=("parallel",),
            vmem_limit_bytes=48 * 1024 * 1024,
        ),
        cost_estimate=cost,
    )(xp, w_cat, b_cat)

    out = out.reshape(n_rows * PACK, E)
    return out[:N] if rem else out


def highway_ref(x, w_proj, b_proj, w_gate, b_gate):
    x_proj = jax.nn.relu(x @ w_proj.T + b_proj)
    x_gate = jax.nn.sigmoid(x @ w_gate.T + b_gate)
    return x_gate * x_proj + (1.0 - x_gate) * x


if __name__ == "__main__":
    key = jax.random.PRNGKey(0)
    word_embed_size = 32
    batch = 100   # (batch_size * sentence_length) words

    k_x, k_wp, k_bp, k_wg, k_bg = jax.random.split(key, 5)
    bound = 1.0 / jnp.sqrt(word_embed_size)
    x = jax.random.normal(k_x, (batch, word_embed_size), dtype=jnp.float32)
    w_proj = jax.random.uniform(k_wp, (word_embed_size, word_embed_size),
                                minval=-bound, maxval=bound, dtype=jnp.float32)
    b_proj = jax.random.uniform(k_bp, (word_embed_size,),
                                minval=-bound, maxval=bound, dtype=jnp.float32)
    w_gate = jax.random.uniform(k_wg, (word_embed_size, word_embed_size),
                                minval=-bound, maxval=bound, dtype=jnp.float32)
    b_gate = jax.random.uniform(k_bg, (word_embed_size,),
                                minval=-bound, maxval=bound, dtype=jnp.float32)

    # Fused / packed params are built once (hoisted out of the per-call path).
    w_cat, b_cat = make_highway_params(w_proj, b_proj, w_gate, b_gate)

    out = highway(x, w_cat, b_cat)
    out = jax.block_until_ready(out)

    ref = highway_ref(x, w_proj, b_proj, w_gate, b_gate)
    assert out.shape == (batch, word_embed_size)
    assert jnp.allclose(out, ref, atol=1e-5, rtol=1e-5), "mismatch vs reference"

    print("KERNEL_OK")
</pallas_src>

<mosaic_0001>
module attributes {stable_mosaic.version = 11 : i64} {
  func.func @highway_kernel(%arg0: i32, %arg1: memref<16x128xf32, #tpu.memory_space<vmem>>, %arg2: memref<128x256xf32, #tpu.memory_space<vmem>>, %arg3: memref<1x256xf32, #tpu.memory_space<vmem>>, %arg4: memref<16x128xf32, #tpu.memory_space<vmem>>) attributes {dimension_semantics = [#tpu.dimension_semantics<parallel>], iteration_bounds = array<i64: 2>, scalar_prefetch = 0 : i64, scratch_operands = 0 : i64, tpu.core_type = #tpu.core_type<tc>, window_params = [{transform_indices = @transform_0, window_bounds = array<i64: 16, 128>}, {pipeline_mode = #tpu.pipeline_mode<synchronous>, transform_indices = @transform_1, window_bounds = array<i64: 128, 256>}, {pipeline_mode = #tpu.pipeline_mode<synchronous>, transform_indices = @transform_2, window_bounds = array<i64: 1, 256>}, {transform_indices = @transform_3, window_bounds = array<i64: 16, 128>}]} {
    %c0 = arith.constant 0 : index
    %c0_0 = arith.constant 0 : index
    %0 = vector.load %arg1[%c0, %c0_0] : memref<16x128xf32, #tpu.memory_space<vmem>>, vector<16x128xf32>
    %c0_1 = arith.constant 0 : index
    %c0_2 = arith.constant 0 : index
    %1 = vector.load %arg2[%c0_1, %c0_2] : memref<128x256xf32, #tpu.memory_space<vmem>>, vector<128x256xf32>
    %cst = arith.constant dense<0.000000e+00> : vector<16x256xf32>
    %2 = tpu.matmul %0, %1, %cst {dimension_numbers = #tpu.dot_dimension_numbers<[1], [0], [0], [1], [0, 0, 1, 1], [], []>} : vector<16x128xf32>, vector<128x256xf32>, vector<16x256xf32> -> vector<16x256xf32>
    %c0_3 = arith.constant 0 : index
    %c0_4 = arith.constant 0 : index
    %3 = vector.load %arg3[%c0_3, %c0_4] : memref<1x256xf32, #tpu.memory_space<vmem>>, vector<1x256xf32>
    %4 = vector.broadcast %3 : vector<1x256xf32> to vector<16x256xf32>
    %5 = arith.addf %2, %4 : vector<16x256xf32>
    %6 = vector.extract_strided_slice %5 {offsets = [0, 0], sizes = [16, 128], strides = [1, 1]} : vector<16x256xf32> to vector<16x128xf32>
    %cst_5 = arith.constant 0.000000e+00 : f32
    %7 = vector.broadcast %cst_5 : f32 to vector<16x128xf32>
    %8 = arith.maximumf %6, %7 : vector<16x128xf32>
    %9 = vector.extract_strided_slice %5 {offsets = [0, 128], sizes = [16, 128], strides = [1, 1]} : vector<16x256xf32> to vector<16x128xf32>
    %10 = arith.negf %9 : vector<16x128xf32>
    %11 = math.exp %10 : vector<16x128xf32>
    %cst_6 = arith.constant 1.000000e+00 : f32
    %12 = vector.broadcast %cst_6 : f32 to vector<16x128xf32>
    %13 = arith.addf %12, %11 : vector<16x128xf32>
    %14 = arith.divf %12, %13 : vector<16x128xf32>
    %15 = arith.subf %8, %0 : vector<16x128xf32>
    %16 = arith.mulf %14, %15 : vector<16x128xf32>
    %17 = arith.addf %0, %16 : vector<16x128xf32>
    %c0_7 = arith.constant 0 : index
    %c0_8 = arith.constant 0 : index
    %18 = vector.load %arg4[%c0_7, %c0_8] : memref<16x128xf32, #tpu.memory_space<vmem>>, vector<16x128xf32>
    tpu.vector_store %arg4[%c0_7, %c0_8], %17 {strides = array<i32>} : memref<16x128xf32, #tpu.memory_space<vmem>>, vector<16x128xf32>,
    return
  }
  func.func @transform_0(%arg0: i32) -> (i32, i32) {
    %c0_i32 = arith.constant 0 : i32
    %c0_i32_0 = arith.constant 0 : i32
    return %arg0, %c0_i32 : i32, i32
  }
  func.func @transform_1(%arg0: i32) -> (i32, i32) {
    %c0_i32 = arith.constant 0 : i32
    %c0_i32_0 = arith.constant 0 : i32
    %c0_i32_1 = arith.constant 0 : i32
    return %c0_i32, %c0_i32_0 : i32, i32
  }
  func.func @transform_2(%arg0: i32) -> (i32, i32) {
    %c0_i32 = arith.constant 0 : i32
    %c0_i32_0 = arith.constant 0 : i32
    %c0_i32_1 = arith.constant 0 : i32
    return %c0_i32, %c0_i32_0 : i32, i32
  }
  func.func @transform_3(%arg0: i32) -> (i32, i32) {
    %c0_i32 = arith.constant 0 : i32
    %c0_i32_0 = arith.constant 0 : i32
    return %arg0, %c0_i32 : i32, i32
  }
}

</mosaic_0001>

<bundles_post_ra>
// kernel: highway.1
= control target key start
LH: loop header
LB: loop body
LE: loop exit
PB: predicated region body
PF: predicated region fallthrough
CT: control target
= control target key end

     0   :  { %s453_s12 = smov 0   ;;  %s590_s0 = inlined_call_operand.vmem [shape: f32[25,128], index: 0, kind: input, shape index: {}]   ;;  %s591_s1 = inlined_call_operand.vmem [shape: f32[128,256], index: 1, kind: input, shape index: {}]   ;;  %s592_s2 = inlined_call_operand.vmem [shape: f32[1,256], index: 2, kind: input, shape index: {}]   ;;  %s593_s3 = inlined_call_operand.vmem [shape: f32[25,128], index: 3, kind: output, shape index: {}]  }
   0x1 LB: > { %s364_s13 = sadd.s32 4294967295, %s431_s12   ;;  %p368_p0 = scmp.ge.s32.totalorder %s431_s12, 1  ;;  %s431_s12 = sphi %s453_s12, %s13_s12  }
   0x2   : > { %p138_p1 = scmp.lt.s32.totalorder %s431_s12, 3 }
   0x4   : > { %p139_p2 = pnand %p368_p0, %p138_p1 }
   0x5   : > { %s369_s15 = sshll.u32 (!%p139_p2), %s364_s13, 1 }
   0x6   : > { %142 = sbr.rel (%p139_p2) target bundleno = 210 (0xd2), region = 32  ;;  %p163_p3 = scmp.lt.s32.totalorder (!%p139_p2), %s369_s15, 3 }
   0xb   : > { %v207_v0 = vld [vmem:[%s591_s1 + $0xf8] sm:$0xff]  ;;  %v205_v1 = vld [vmem:[%s591_s1 + $0xe8] sm:$0xff]  ;;  %v206_v4 = vld [vmem:[%s591_s1 + $0xf0] sm:$0xff]  ;;  %s595_s15 = smov (!%p163_p3, %s369_s15), 3 }
   0xc   : > { %237 = vmatpush.msra.mxu1 %v207_v0  ;;  %393 = vmatpush.msra.mxu3 %v207_v0  ;;  %v203_v2 = vld [vmem:[%s591_s1 + $0xd8] sm:$0xff]  ;;  %v201_v3 = vld [vmem:[%s591_s1 + $0xc8] sm:$0xff]  ;;  %v204_v5 = vld [vmem:[%s591_s1 + $0xe0] sm:$0xff]  ;;  %s370_s8 = sshll.u32 %s595_s15, 3 }
   0xd   : > { %v199_v6 = vld [vmem:[%s591_s1 + $0xb8] sm:$0xff]  ;;  %214 = vmatpush.msra.mxu0 %v206_v4  ;;  %377 = vmatpush.msra.mxu2 %v206_v4  ;;  %v202_v7 = vld [vmem:[%s591_s1 + $0xd0] sm:$0xff]  ;;  %v197_v8 = vld [vmem:[%s591_s1 + $0xa8] sm:$0xff]  ;;  %s166_s13 = scalar_lea.vmem %s590_s0, %s370_s8  ;;  %s172_s10 = scalar_lea.vmem %s593_s3, %s370_s8 }
   0xe   : > { %238 = vmatpush.msra.mxu1 %v205_v1  ;;  %394 = vmatpush.msra.mxu3 %v205_v1  ;;  %v200_v9 = vld [vmem:[%s591_s1 + $0xc0] sm:$0xff]  ;;  %v195_v10 = vld [vmem:[%s591_s1 + $0x98] sm:$0xff]  ;;  %v198_v11 = vld [vmem:[%s591_s1 + $0xb0] sm:$0xff] }
   0xf   : > { %215 = vmatpush.msra.mxu0 %v204_v5  ;;  %378 = vmatpush.msra.mxu2 %v204_v5  ;;  %v193_v12 = vld [vmem:[%s591_s1 + $0x88] sm:$0xff]  ;;  %v196_v13 = vld [vmem:[%s591_s1 + $0xa0] sm:$0xff]  ;;  %v191_v14 = vld [vmem:[%s591_s1 + $0x78] sm:$0xff] }
  0x10   : > { %239 = vmatpush.msra.mxu1 %v203_v2  ;;  %395 = vmatpush.msra.mxu3 %v203_v2  ;;  %v194_v15 = vld [vmem:[%s591_s1 + $0x90] sm:$0xff]  ;;  %v189_v16 = vld [vmem:[%s591_s1 + $0x68] sm:$0xff]  ;;  %v192_v17 = vld [vmem:[%s591_s1 + $0x80] sm:$0xff] }
  0x11   : > { %216 = vmatpush.msra.mxu0 %v202_v7  ;;  %379 = vmatpush.msra.mxu2 %v202_v7  ;;  %v187_v18 = vld [vmem:[%s591_s1 + $0x58] sm:$0xff]  ;;  %v190_v19 = vld [vmem:[%s591_s1 + $0x70] sm:$0xff]  ;;  %v185_v20 = vld [vmem:[%s591_s1 + $0x48] sm:$0xff] }
  0x12   : > { %240 = vmatpush.msra.mxu1 %v201_v3  ;;  %396 = vmatpush.msra.mxu3 %v201_v3  ;;  %v188_v21 = vld [vmem:[%s591_s1 + $0x60] sm:$0xff]  ;;  %v183_v22 = vld [vmem:[%s591_s1 + $0x38] sm:$0xff]  ;;  %v186_v23 = vld [vmem:[%s591_s1 + $0x50] sm:$0xff] }
  0x13   : > { %217 = vmatpush.msra.mxu0 %v200_v9  ;;  %380 = vmatpush.msra.mxu2 %v200_v9  ;;  %v181_v24 = vld [vmem:[%s591_s1 + $0x28] sm:$0xff]  ;;  %v184_v25 = vld [vmem:[%s591_s1 + $0x40] sm:$0xff]  ;;  %v179_v26 = vld [vmem:[%s591_s1 + $0x18] sm:$0xff] }
  0x14   : > { %241 = vmatpush.msra.mxu1 %v199_v6  ;;  %397 = vmatpush.msra.mxu3 %v199_v6  ;;  %v182_v27 = vld [vmem:[%s591_s1 + $0x30] sm:$0xff]  ;;  %v177_v28 = vld [vmem:[%s591_s1 + $0x8] sm:$0xff]  ;;  %v558_v29 = vld [vmem:[%s166_s13] sm:$0xff] }
  0x15   : > { %218 = vmatpush.msra.mxu0 %v198_v11  ;;  %381 = vmatpush.msra.mxu2 %v198_v11  ;;  %v560_v30 = vld [vmem:[%s166_s13 + $0x8] sm:$0xff]  ;;  %v180_v31 = vld [vmem:[%s591_s1 + $0x20] sm:$0xff]  ;;  %v178_v32 = vld [vmem:[%s591_s1 + $0x10] sm:$0xff] }
  0x16   : > { %242 = vmatpush.msra.mxu1 %v197_v8  ;;  %398 = vmatpush.msra.mxu3 %v197_v8  ;;  %v176_v33 = vld [vmem:[%s591_s1] sm:$0xff] }
  0x17   : > { %219 = vmatpush.msra.mxu0 %v196_v13  ;;  %382 = vmatpush.msra.mxu2 %v196_v13  ;;  %v208_v34 = vld [vmem:[%s592_s2] sm:$0x3] }
  0x18   : > { %243 = vmatpush.msra.mxu1 %v195_v10  ;;  %399 = vmatpush.msra.mxu3 %v195_v10  ;;  %v211_v35 = vperm.slane %v208_v34, 1  ;;  %v210_v44 = vperm.slane %v208_v34, 0 }
  0x19   : > { %220 = vmatpush.msra.mxu0 %v194_v15  ;;  %383 = vmatpush.msra.mxu2 %v194_v15 }
  0x1a   : > { %244 = vmatpush.msra.mxu1 %v193_v12  ;;  %400 = vmatpush.msra.mxu3 %v193_v12 }
  0x1b   : > { %221 = vmatpush.msra.mxu0 %v192_v17  ;;  %384 = vmatpush.msra.mxu2 %v192_v17 }
  0x1c   : > { %245 = vmatpush.msra.mxu1 %v191_v14  ;;  %401 = vmatpush.msra.mxu3 %v191_v14 }
  0x1d   : > { %222 = vmatpush.msra.mxu0 %v190_v19  ;;  %385 = vmatpush.msra.mxu2 %v190_v19 }
  0x1e   : > { %246 = vmatpush.msra.mxu1 %v189_v16  ;;  %402 = vmatpush.msra.mxu3 %v189_v16 }
  0x1f   : > { %223 = vmatpush.msra.mxu0 %v188_v21  ;;  %386 = vmatpush.msra.mxu2 %v188_v21 }
  0x20   : > { %247 = vmatpush.msra.mxu1 %v187_v18  ;;  %403 = vmatpush.msra.mxu3 %v187_v18 }
  0x21   : > { %224 = vmatpush.msra.mxu0 %v186_v23  ;;  %387 = vmatpush.msra.mxu2 %v186_v23 }
  0x22   : > { %248 = vmatpush.msra.mxu1 %v185_v20  ;;  %404 = vmatpush.msra.mxu3 %v185_v20 }
  0x23   : > { %225 = vmatpush.msra.mxu0 %v184_v25  ;;  %388 = vmatpush.msra.mxu2 %v184_v25 }
  0x24   : > { %249 = vmatpush.msra.mxu1 %v183_v22  ;;  %405 = vmatpush.msra.mxu3 %v183_v22 }
  0x25   : > { %226 = vmatpush.msra.mxu0 %v182_v27  ;;  %389 = vmatpush.msra.mxu2 %v182_v27 }
  0x26   : > { %250 = vmatpush.msra.mxu1 %v181_v24  ;;  %406 = vmatpush.msra.mxu3 %v181_v24 }
  0x27   : > { %227 = vmatpush.msra.mxu0 %v180_v31  ;;  %390 = vmatpush.msra.mxu2 %v180_v31 }
  0x28   : > { %251 = vmatpush.msra.mxu1 %v179_v26  ;;  %407 = vmatpush.msra.mxu3 %v179_v26 }
  0x29   : > { %228 = vmatpush.msra.mxu0 %v178_v32  ;;  %391 = vmatpush.msra.mxu2 %v178_v32 }
  0x2a   : > { %252 = vmatpush.msra.mxu1 %v177_v28  ;;  %408 = vmatpush.msra.mxu3 %v177_v28 }
  0x2b   : > { %253 = vmatmul.f32.vlgmr.msra.gmra.mxu1 %v558_v29  ;;  %256 = vmatmul.f32.vlgmr.msra.gmra.mxu3 %v560_v30 }
  0x2c   : > { %229 = vmatpush.msra.mxu0 %v176_v33  ;;  %392 = vmatpush.msra.mxu2 %v176_v33 }
  0x2d   : > { %230 = vmatmul.f32.vlgmr.msra.gmra.mxu0 %v558_v29  ;;  %233 = vmatmul.f32.vlgmr.msra.gmra.mxu2 %v560_v30 }
  0xa8   : > { %v254_v36 = vpop.f32.mrf.mxu1 }
  0xa9   : > { %v255_v37 = vadd.f32 %v254_v36, %v211_v35 }
  0xaa   : > { %v231_v45 = vpop.f32.mrf.mxu0 }
  0xab   : > { %v373_v38 = vmul.f32 -1.442695, %v255_v37  ;;  %v232_v48 = vadd.f32 %v231_v45, %v210_v44 }
  0xad   : > { %417 = vpow2.f32 %v373_v38  ;;  %v260_v53 = vmax.f32 %v232_v48, 0.0 }
  0xae   : > { %v257_v39 = vpop.f32.mrf.mxu3 }
  0xaf   : > { %v258_v40 = vadd.f32 %v257_v39, %v211_v35  ;;  %v300_v61 = vsub.f32 %v260_v53, %v558_v29 }
  0xb0   : > { %v234_v51 = vpop.f32.mrf.mxu2 }
  0xb1   : > { %v374_v41 = vmul.f32 -1.442695, %v258_v40  ;;  %v235_v57 = vadd.f32 %v234_v51, %v210_v44 }
  0xb3   : > { %v418_v42 = vpop.eup %417  ;;  %419 = vpow2.f32 %v374_v41  ;;  %v261_v1 = vmax.f32 %v235_v57, 0.0 }
  0xb4   : > { %v268_v43 = vadd.f32 1.0, %v418_v42 }
  0xb5   : > { %v301_v9 = vsub.f32 %v261_v1, %v560_v30 }
  0xb6   : > { %421 = vrcp.f32 %v268_v43  ;;  %v281_v54 = vand.u32 2147483648, %v268_v43  ;;  %v279_v56 = vand.u32 2147483647, %v268_v43  ;;  %vm275_vm1 = vweird.f32 %v268_v43 }
  0xb8   : > { %v282_v62 = vor.u32 1.1754944e-38, %v281_v54  ;;  %vm280_vm3 = vcmp.eq.f32.partialorder %v279_v56, 8.507059e+37 }
  0xb9   : > { %v420_v46 = vpop.eup %419 }
  0xba   : > { %v269_v47 = vadd.f32 1.0, %v420_v46 }
  0xbc   : > { %v422_v49 = vpop.eup %421  ;;  %423 = vrcp.f32 %v269_v47  ;;  %v296_v3 = vand.u32 2147483648, %v269_v47  ;;  %v294_v6 = vand.u32 2147483647, %v269_v47  ;;  %vm290_vm5 = vweird.f32 %v269_v47 }
  0xbd   : > { %v271_v50 = vmul.f32 %v422_v49, %v268_v43  ;;  %vm276_vm0 = vweird.f32 %v422_v49 }
  0xbe   : > { %vm277_vm2 = vmor %vm275_vm1, %vm276_vm0  ;;  %v297_v10 = vor.u32 1.1754944e-38, %v296_v3  ;;  %vm295_vm7 = vcmp.eq.f32.partialorder %v294_v6, 8.507059e+37 }
  0xbf   : > { %v272_v52 = vsub.f32 1.0, %v271_v50 }
  0xc1   : > { %v273_v55 = vmul.f32 %v422_v49, %v272_v52 }
  0xc2   : > { %v424_v58 = vpop.eup %423 }
  0xc3   : > { %v286_v59 = vmul.f32 %v424_v58, %v269_v47  ;;  %v274_v60 = vadd.f32 %v422_v49, %v273_v55  ;;  %vm291_vm4 = vweird.f32 %v424_v58 }
  0xc4   : > { %vm292_vm6 = vmor %vm290_vm5, %vm291_vm4 }
  0xc5   : > { %v287_v63 = vsub.f32 1.0, %v286_v59  ;;  %v278_v0 = vsel %vm277_vm2, %v422_v49, %v274_v60 }
  0xc6   : > { %v283_v2 = vsel %vm280_vm3, %v282_v62, %v278_v0 }
  0xc7   : > { %v302_v4 = vmul.f32 %v300_v61, %v283_v2  ;;  %v288_v5 = vmul.f32 %v424_v58, %v287_v63 }
  0xc9   : > { %v304_v7 = vadd.f32 %v302_v4, %v558_v29  ;;  %v289_v8 = vadd.f32 %v424_v58, %v288_v5 }
  0xcb   : > { %306 = vst [vmem:[%s172_s10] sm:$0xff] %v304_v7  ;;  %v293_v11 = vsel %vm292_vm6, %v424_v58, %v289_v8 }
  0xcc   : > { %v298_v12 = vsel %vm295_vm7, %v297_v10, %v293_v11 }
  0xcd   : > { %v303_v13 = vmul.f32 %v301_v9, %v298_v12 }
  0xcf   : > { %v305_v14 = vadd.f32 %v303_v13, %v560_v30 }
  0xd1   : > { %307 = vst [vmem:[%s172_s10 + $0x8] sm:$0xff] %v305_v14 }
  0xd2 PF: > { %s13_s12 = sadd.s32 1, %s431_s12  }
  0xd3   : > { %p10_p4 = scmp.ge.s32.totalorder %s13_s12, 4  }
  0xd5   :  { %12 = sbr.rel (!%p10_p4) target bundleno = 1 (0x1), region = 62 }

</bundles_post_ra>
